<compile_context>
chip_gen: v7x
topology: tpu7x:2x2x1
jax: 0.10.0
libtpu: 0.0.40
codegen_flags: <defaults>
</compile_context>

<pallas_src>
import functools

import jax
import jax.numpy as jnp
from jax.experimental import pallas as pl
from jax.experimental.pallas import tpu as pltpu

LANE = 128      # vreg lane width (last-dim tiling unit)
SUBLANE = 8     # vreg sublane width (second-to-last-dim tiling unit)


def _round_up(x, m):
    return (x + m - 1) // m * m


# ----------------------------------------------------------------------------
# Fused kernel: ONE grid step, all DEPTH layers statically unrolled.
# ----------------------------------------------------------------------------
def _fused_gnn_kernel(x_ref, a_ref, w_ref, b_ref, o_ref, *, depth):
    a = a_ref[...]                      # [N_pad, N_pad] bf16 (loaded once, resident)
    h = x_ref[...]                      # [N_pad, 128]   bf16 (padded node features)

    for l in range(depth):              # static unroll over layers
        # Feature transform: H @ W_l  (bf16 MXU operands, f32 accumulation).
        xw = jnp.dot(h, w_ref[l], preferred_element_type=jnp.float32)
        # Neighborhood aggregation: A_hat @ (H W_l).
        agg = jnp.dot(a, xw.astype(jnp.bfloat16), preferred_element_type=jnp.float32)
        # Bias + ReLU in f32 (keep elementwise math f32 for the v5e VPU).
        h_f32 = jnp.maximum(agg + b_ref[l], 0.0)
        if l + 1 < depth:
            h = h_f32.astype(jnp.bfloat16)   # next layer's MXU operand
        else:
            o_ref[...] = h_f32               # single lane-dense store at kernel end


# ----------------------------------------------------------------------------
# One-time preprocessing: pad to lane-dense layout, stack per-layer params,
# cast MXU operands to bf16.  Hoisted out of the per-forward hot path — cache
# the returned arrays across forwards.
# ----------------------------------------------------------------------------
def prepare_gnn_inputs(x, a_hat, weights, biases):
    n, f_in = x.shape
    depth = len(weights)
    f_out = weights[0].shape[1]
    assert f_in <= LANE and f_out <= LANE   # pad feature dims to one full lane width

    n_pad = _round_up(n, SUBLANE)
    f_pad = LANE

    x_p = (jnp.zeros((n_pad, f_pad), jnp.float32)
           .at[:n, :f_in].set(x).astype(jnp.bfloat16))            # [N_pad, 128] bf16
    a_p = (jnp.zeros((n_pad, n_pad), jnp.float32)
           .at[:n, :n].set(a_hat).astype(jnp.bfloat16))           # [N_pad, N_pad] bf16

    w_stack, b_stack = [], []
    for w, b in zip(weights, biases):
        fi, fo = w.shape
        w_stack.append(jnp.zeros((f_pad, f_pad), jnp.float32).at[:fi, :fo].set(w))
        b_stack.append(jnp.zeros((1, f_pad), jnp.float32).at[0, :fo].set(b.reshape(-1)))
    w_p = jnp.stack(w_stack).astype(jnp.bfloat16)                 # [depth, 128, 128]
    b_p = jnp.stack(b_stack)                                      # [depth, 1, 128] f32

    return x_p, a_p, w_p, b_p, n, f_out, depth


# ----------------------------------------------------------------------------
# Jitted forward: just the fused pallas_call + final slice.
# ----------------------------------------------------------------------------
@functools.partial(jax.jit, static_argnames=("n", "f_out", "depth"))
def gnn_encoder_forward_padded(x_p, a_p, w_p, b_p, *, n, f_out, depth):
    n_pad, f_pad = x_p.shape

    grid_spec = pltpu.PrefetchScalarGridSpec(
        num_scalar_prefetch=0,
        grid=(1,),                                              # single fused step
        in_specs=[
            pl.BlockSpec((n_pad, f_pad), lambda i: (0, 0)),            # X (bf16)
            pl.BlockSpec((n_pad, n_pad), lambda i: (0, 0)),            # A_hat (bf16)
            pl.BlockSpec((depth, f_pad, f_pad), lambda i: (0, 0, 0)),  # W stack (bf16)
            pl.BlockSpec((depth, 1, f_pad), lambda i: (0, 0, 0)),      # b stack (f32)
        ],
        out_specs=pl.BlockSpec((n_pad, f_pad), lambda i: (0, 0)),
    )

    out = pl.pallas_call(
        functools.partial(_fused_gnn_kernel, depth=depth),
        out_shape=jax.ShapeDtypeStruct((n_pad, f_pad), jnp.float32),
        grid_spec=grid_spec,
        compiler_params=pltpu.CompilerParams(
            dimension_semantics=("arbitrary",),
        ),
    )(x_p, a_p, w_p, b_p)

    return out[:n, :f_out]


def gnn_encoder_forward(x, a_hat, weights, biases):
    """Convenience entry point: preprocess (one-time cost) + fused kernel."""
    x_p, a_p, w_p, b_p, n, f_out, depth = prepare_gnn_inputs(x, a_hat, weights, biases)
    return gnn_encoder_forward_padded(x_p, a_p, w_p, b_p, n=n, f_out=f_out, depth=depth)


# ----------------------------------------------------------------------------
# Glue: dense normalized adjacency, matching PyG gcn_norm semantics
# (add_remaining_self_loops: every node gets exactly one self-loop of weight 1,
# existing self-loop edges are replaced rather than doubled).
# ----------------------------------------------------------------------------
def build_normalized_adjacency(edge_index, num_nodes):
    src, dst = edge_index[0], edge_index[1]
    a = jnp.zeros((num_nodes, num_nodes), jnp.float32).at[dst, src].add(1.0)
    diag = jnp.eye(num_nodes, dtype=bool)
    a = jnp.where(diag, 1.0, a)                         # add_remaining_self_loops
    deg = a.sum(axis=1)
    d_inv_sqrt = jnp.where(deg > 0, 1.0 / jnp.sqrt(deg), 0.0)
    return d_inv_sqrt[:, None] * a * d_inv_sqrt[None, :]


# ----------------------------------------------------------------------------
# Pure-JAX references (bf16-matched for a tight check, f32 for a loose check)
# ----------------------------------------------------------------------------
def _ref_forward(x, a_hat, weights, biases, cast_bf16):
    h = x
    a = a_hat.astype(jnp.bfloat16) if cast_bf16 else a_hat
    for w, b in zip(weights, biases):
        wc = w.astype(jnp.bfloat16) if cast_bf16 else w
        hc = h.astype(jnp.bfloat16) if cast_bf16 else h
        hw = jnp.dot(hc, wc, preferred_element_type=jnp.float32)
        hwc = hw.astype(jnp.bfloat16) if cast_bf16 else hw
        agg = jnp.dot(a, hwc, preferred_element_type=jnp.float32)
        h = jnp.maximum(agg + b.reshape(1, -1), 0.0)
    return h


if __name__ == "__main__":
    key = jax.random.PRNGKey(0)

    N = 128          # number of graph nodes
    IN_FEATURES = 16
    HIDDEN_DIM = 32
    DEPTH = 3
    E = 512          # number of directed edges

    k_x, k_e, k_w = jax.random.split(key, 3)

    # data.x, data.edge_index
    x = jax.random.normal(k_x, (N, IN_FEATURES), dtype=jnp.float32)
    edge_index = jax.random.randint(k_e, (2, E), 0, N, dtype=jnp.int32)

    a_hat = build_normalized_adjacency(edge_index, N)

    # Deterministic Glorot-style init for DEPTH GCNConv layers
    weights, biases = [], []
    fan_in = IN_FEATURES
    for d in range(DEPTH):
        k_w, k_wl, k_bl = jax.random.split(k_w, 3)
        scale = jnp.sqrt(2.0 / (fan_in + HIDDEN_DIM))
        weights.append(scale * jax.random.normal(
            k_wl, (fan_in, HIDDEN_DIM), dtype=jnp.float32))
        biases.append(0.01 * jax.random.normal(
            k_bl, (HIDDEN_DIM,), dtype=jnp.float32))
        fan_in = HIDDEN_DIM

    # One-time preprocessing (pad + bf16 cast + stack), then the fused kernel.
    x_p, a_p, w_p, b_p, n, f_out, depth = prepare_gnn_inputs(x, a_hat, weights, biases)
    out = gnn_encoder_forward_padded(x_p, a_p, w_p, b_p, n=n, f_out=f_out, depth=depth)
    out = jax.block_until_ready(out)

    # Checks: tight vs bf16-matched reference, loose vs pure-f32 reference.
    ref_bf16 = _ref_forward(x, a_hat, weights, biases, cast_bf16=True)
    ref_f32 = _ref_forward(x, a_hat, weights, biases, cast_bf16=False)
    assert out.shape == (N, HIDDEN_DIM)
    assert jnp.allclose(out, ref_bf16, atol=1e-3, rtol=1e-3)
    assert jnp.allclose(out, ref_f32, atol=7e-2, rtol=7e-2)

    print("KERNEL_OK")
</pallas_src>

<mosaic_0001>
module attributes {stable_mosaic.version = 11 : i64} {
  func.func @_fused_gnn_kernel(%arg0: i32, %arg1: memref<128x128xbf16, #tpu.memory_space<vmem>>, %arg2: memref<128x128xbf16, #tpu.memory_space<vmem>>, %arg3: memref<3x128x128xbf16, #tpu.memory_space<vmem>>, %arg4: memref<3x1x128xf32, #tpu.memory_space<vmem>>, %arg5: memref<128x128xf32, #tpu.memory_space<vmem>>) attributes {dimension_semantics = [#tpu.dimension_semantics<arbitrary>], iteration_bounds = array<i64: 1>, scalar_prefetch = 0 : i64, scratch_operands = 0 : i64, tpu.core_type = #tpu.core_type<tc>, window_params = [{pipeline_mode = #tpu.pipeline_mode<synchronous>, transform_indices = @transform_0, window_bounds = array<i64: 128, 128>}, {pipeline_mode = #tpu.pipeline_mode<synchronous>, transform_indices = @transform_1, window_bounds = array<i64: 128, 128>}, {pipeline_mode = #tpu.pipeline_mode<synchronous>, transform_indices = @transform_2, window_bounds = array<i64: 3, 128, 128>}, {pipeline_mode = #tpu.pipeline_mode<synchronous>, transform_indices = @transform_3, window_bounds = array<i64: 3, 1, 128>}, {pipeline_mode = #tpu.pipeline_mode<synchronous>, transform_indices = @transform_4, window_bounds = array<i64: 128, 128>}]} {
    %c0 = arith.constant 0 : index
    %c0_0 = arith.constant 0 : index
    %0 = vector.load %arg2[%c0, %c0_0] : memref<128x128xbf16, #tpu.memory_space<vmem>>, vector<128x128xbf16>
    %c0_1 = arith.constant 0 : index
    %c0_2 = arith.constant 0 : index
    %1 = vector.load %arg1[%c0_1, %c0_2] : memref<128x128xbf16, #tpu.memory_space<vmem>>, vector<128x128xbf16>
    %c0_3 = arith.constant 0 : index
    %c0_4 = arith.constant 0 : index
    %c0_5 = arith.constant 0 : index
    %2 = vector.load %arg3[%c0_3, %c0_4, %c0_5] : memref<3x128x128xbf16, #tpu.memory_space<vmem>>, vector<1x128x128xbf16>
    %3 = vector.shape_cast %2 : vector<1x128x128xbf16> to vector<128x128xbf16>
    %cst = arith.constant dense<0.000000e+00> : vector<128x128xf32>
    %4 = tpu.matmul %1, %3, %cst {dimension_numbers = #tpu.dot_dimension_numbers<[1], [0], [0], [1], [0, 0, 1, 1], [], []>} : vector<128x128xbf16>, vector<128x128xbf16>, vector<128x128xf32> -> vector<128x128xf32>
    %5 = arith.truncf %4 : vector<128x128xf32> to vector<128x128xbf16>
    %cst_6 = arith.constant dense<0.000000e+00> : vector<128x128xf32>
    %6 = tpu.matmul %0, %5, %cst_6 {dimension_numbers = #tpu.dot_dimension_numbers<[1], [0], [0], [1], [0, 0, 1, 1], [], []>} : vector<128x128xbf16>, vector<128x128xbf16>, vector<128x128xf32> -> vector<128x128xf32>
    %c0_7 = arith.constant 0 : index
    %c0_8 = arith.constant 0 : index
    %c0_9 = arith.constant 0 : index
    %7 = vector.load %arg4[%c0_7, %c0_8, %c0_9] : memref<3x1x128xf32, #tpu.memory_space<vmem>>, vector<1x1x128xf32>
    %8 = vector.shape_cast %7 : vector<1x1x128xf32> to vector<1x128xf32>
    %9 = vector.broadcast %8 : vector<1x128xf32> to vector<128x128xf32>
    %10 = arith.addf %6, %9 : vector<128x128xf32>
    %cst_10 = arith.constant 0.000000e+00 : f32
    %11 = vector.broadcast %cst_10 : f32 to vector<128x128xf32>
    %12 = arith.maximumf %10, %11 : vector<128x128xf32>
    %13 = arith.truncf %12 : vector<128x128xf32> to vector<128x128xbf16>
    %c1 = arith.constant 1 : index
    %c0_11 = arith.constant 0 : index
    %c0_12 = arith.constant 0 : index
    %14 = vector.load %arg3[%c1, %c0_11, %c0_12] : memref<3x128x128xbf16, #tpu.memory_space<vmem>>, vector<1x128x128xbf16>
    %15 = vector.shape_cast %14 : vector<1x128x128xbf16> to vector<128x128xbf16>
    %cst_13 = arith.constant dense<0.000000e+00> : vector<128x128xf32>
    %16 = tpu.matmul %13, %15, %cst_13 {dimension_numbers = #tpu.dot_dimension_numbers<[1], [0], [0], [1], [0, 0, 1, 1], [], []>} : vector<128x128xbf16>, vector<128x128xbf16>, vector<128x128xf32> -> vector<128x128xf32>
    %17 = arith.truncf %16 : vector<128x128xf32> to vector<128x128xbf16>
    %cst_14 = arith.constant dense<0.000000e+00> : vector<128x128xf32>
    %18 = tpu.matmul %0, %17, %cst_14 {dimension_numbers = #tpu.dot_dimension_numbers<[1], [0], [0], [1], [0, 0, 1, 1], [], []>} : vector<128x128xbf16>, vector<128x128xbf16>, vector<128x128xf32> -> vector<128x128xf32>
    %c1_15 = arith.constant 1 : index
    %c0_16 = arith.constant 0 : index
    %c0_17 = arith.constant 0 : index
    %19 = vector.load %arg4[%c1_15, %c0_16, %c0_17] : memref<3x1x128xf32, #tpu.memory_space<vmem>>, vector<1x1x128xf32>
    %20 = vector.shape_cast %19 : vector<1x1x128xf32> to vector<1x128xf32>
    %21 = vector.broadcast %20 : vector<1x128xf32> to vector<128x128xf32>
    %22 = arith.addf %18, %21 : vector<128x128xf32>
    %cst_18 = arith.constant 0.000000e+00 : f32
    %23 = vector.broadcast %cst_18 : f32 to vector<128x128xf32>
    %24 = arith.maximumf %22, %23 : vector<128x128xf32>
    %25 = arith.truncf %24 : vector<128x128xf32> to vector<128x128xbf16>
    %c2 = arith.constant 2 : index
    %c0_19 = arith.constant 0 : index
    %c0_20 = arith.constant 0 : index
    %26 = vector.load %arg3[%c2, %c0_19, %c0_20] : memref<3x128x128xbf16, #tpu.memory_space<vmem>>, vector<1x128x128xbf16>
    %27 = vector.shape_cast %26 : vector<1x128x128xbf16> to vector<128x128xbf16>
    %cst_21 = arith.constant dense<0.000000e+00> : vector<128x128xf32>
    %28 = tpu.matmul %25, %27, %cst_21 {dimension_numbers = #tpu.dot_dimension_numbers<[1], [0], [0], [1], [0, 0, 1, 1], [], []>} : vector<128x128xbf16>, vector<128x128xbf16>, vector<128x128xf32> -> vector<128x128xf32>
    %29 = arith.truncf %28 : vector<128x128xf32> to vector<128x128xbf16>
    %cst_22 = arith.constant dense<0.000000e+00> : vector<128x128xf32>
    %30 = tpu.matmul %0, %29, %cst_22 {dimension_numbers = #tpu.dot_dimension_numbers<[1], [0], [0], [1], [0, 0, 1, 1], [], []>} : vector<128x128xbf16>, vector<128x128xbf16>, vector<128x128xf32> -> vector<128x128xf32>
    %c2_23 = arith.constant 2 : index
    %c0_24 = arith.constant 0 : index
    %c0_25 = arith.constant 0 : index
    %31 = vector.load %arg4[%c2_23, %c0_24, %c0_25] : memref<3x1x128xf32, #tpu.memory_space<vmem>>, vector<1x1x128xf32>
    %32 = vector.shape_cast %31 : vector<1x1x128xf32> to vector<1x128xf32>
    %33 = vector.broadcast %32 : vector<1x128xf32> to vector<128x128xf32>
    %34 = arith.addf %30, %33 : vector<128x128xf32>
    %cst_26 = arith.constant 0.000000e+00 : f32
    %35 = vector.broadcast %cst_26 : f32 to vector<128x128xf32>
    %36 = arith.maximumf %34, %35 : vector<128x128xf32>
    %c0_27 = arith.constant 0 : index
    %c0_28 = arith.constant 0 : index
    %37 = vector.load %arg5[%c0_27, %c0_28] : memref<128x128xf32, #tpu.memory_space<vmem>>, vector<128x128xf32>
    tpu.vector_store %arg5[%c0_27, %c0_28], %36 {strides = array<i32>} : memref<128x128xf32, #tpu.memory_space<vmem>>, vector<128x128xf32>,
    return
  }
  func.func @transform_0(%arg0: i32) -> (i32, i32) {
    %c0_i32 = arith.constant 0 : i32
    %c0_i32_0 = arith.constant 0 : i32
    %c0_i32_1 = arith.constant 0 : i32
    return %c0_i32, %c0_i32_0 : i32, i32
  }
  func.func @transform_1(%arg0: i32) -> (i32, i32) {
    %c0_i32 = arith.constant 0 : i32
    %c0_i32_0 = arith.constant 0 : i32
    %c0_i32_1 = arith.constant 0 : i32
    return %c0_i32, %c0_i32_0 : i32, i32
  }
  func.func @transform_2(%arg0: i32) -> (i32, i32, i32) {
    %c0_i32 = arith.constant 0 : i32
    %c0_i32_0 = arith.constant 0 : i32
    %c0_i32_1 = arith.constant 0 : i32
    %c0_i32_2 = arith.constant 0 : i32
    return %c0_i32, %c0_i32_0, %c0_i32_1 : i32, i32, i32
  }
  func.func @transform_3(%arg0: i32) -> (i32, i32, i32) {
    %c0_i32 = arith.constant 0 : i32
    %c0_i32_0 = arith.constant 0 : i32
    %c0_i32_1 = arith.constant 0 : i32
    %c0_i32_2 = arith.constant 0 : i32
    return %c0_i32, %c0_i32_0, %c0_i32_1 : i32, i32, i32
  }
  func.func @transform_4(%arg0: i32) -> (i32, i32) {
    %c0_i32 = arith.constant 0 : i32
    %c0_i32_0 = arith.constant 0 : i32
    %c0_i32_1 = arith.constant 0 : i32
    return %c0_i32, %c0_i32_0 : i32, i32
  }
}

</mosaic_0001>

<bundles_post_ra>
// kernel: gnn_encoder_forward_padded.1
= control target key start
LH: loop header
LB: loop body
LE: loop exit
PB: predicated region body
PF: predicated region fallthrough
CT: control target
= control target key end

     0   :  { %9 = vsyncpa [#allocation3], 0  ;;  %s1723_s0 = inlined_call_operand.hbm [shape: bf16[128,128], index: 0, kind: input, shape index: {}]   ;;  %s1724_s1 = inlined_call_operand.hbm [shape: bf16[128,128], index: 1, kind: input, shape index: {}]   ;;  %s1725_s2 = inlined_call_operand.hbm [shape: bf16[3,128,128], index: 2, kind: input, shape index: {}]   ;;  %s1726_s3 = inlined_call_operand.vmem [shape: f32[3,1,128], index: 3, kind: input, shape index: {}]   ;;  %s1727_s4 = inlined_call_operand.vmem [shape: f32[128,128], index: 4, kind: output, shape index: {}]  }
   0x1   :  { %10 = vsyncpa [#allocation5], 0  ;;  %s1544_s15 = smov [#allocation4]   ;;  %s1545_s17 = smov [#allocation2]  }
   0x2   :  { %s28_s16 = sshll.u32 %s1544_s15, 4  ;;  %s16_s18 = sshll.u32 %s1545_s17, 4  ;;  %s29_s16 = int_to_ptr.vmem [resolvable:$true] %s28_s16  ;;  %s1574_s18 = int_to_ptr.vmem [resolvable:$true] %s16_s18 }
   0x3   :  { %s1474_s21 = scalar_lea.hbm %s1724_s1, 1024 }
   0x4   :  { %p1475_p0 = scmp.ne.s32.totalorder %s1724_s1, %s1474_s21  ;;  %p1478_p1 = scmp.lt.u32.totalorder %s1474_s21, %s1724_s1 }
   0x6   :  { %p1480_p2 = pnand %p1478_p1, %p1475_p0 }
   0x8   :  { %1483 = shalt.err (!%p1480_p2)
}
   0x9   :  { %s1484_s26 = scalar_lea.vmem %s29_s16, 1024  ;;  %p1489_p4 = scmp.lt.s32.totalorder %s29_s16, %s29_s16 }
   0xa   :  { %p1485_p3 = scmp.ne.s32.totalorder %s29_s16, %s1484_s26  ;;  %p1490_p5 = scmp.lt.s32.totalorder %s1484_s26, %s1484_s26 }
   0xc   :  { %p1491_p6 = por %p1490_p5, %p1489_p4 }
   0xe   :  { %p1492_p7 = pnand %p1491_p6, %p1485_p3 }
  0x10   :  { %1495 = shalt.err (!%p1492_p7)
}
  0x11   :  { %s1546_s27 = smov 64   ;;  %s1547_s28 = smov 4  }
  0x12   :  { %34 = dma.hbm_to_vmem [thread:$0]  %s1724_s1, 1024, %s29_s16, [#allocation5], %s1546_s27, %s1546_s27, %s1547_s28  }
  0x13   :  { %s1496_s7 = scalar_lea.hbm %s1723_s0, 1024 }
  0x14   :  { %p1497_p8 = scmp.ne.s32.totalorder %s1723_s0, %s1496_s7  ;;  %p1500_p9 = scmp.lt.u32.totalorder %s1496_s7, %s1723_s0 }
  0x16   :  { %p1502_p10 = pnand %p1500_p9, %p1497_p8 }
  0x18   :  { %1505 = shalt.err (!%p1502_p10)
}
  0x19   :  { %s1506_s12 = scalar_lea.vmem %s1574_s18, 1024  ;;  %p1511_p12 = scmp.lt.s32.totalorder %s1574_s18, %s1574_s18 }
  0x1a   :  { %p1507_p11 = scmp.ne.s32.totalorder %s1574_s18, %s1506_s12  ;;  %p1512_p13 = scmp.lt.s32.totalorder %s1506_s12, %s1506_s12 }
  0x1c   :  { %p1513_p0 = por %p1512_p13, %p1511_p12 }
  0x1e   :  { %p1514_p1 = pnand %p1513_p0, %p1507_p11 }
  0x20   :  { %1517 = shalt.err (!%p1514_p1)
}
  0x21   :  { %22 = dma.hbm_to_vmem [thread:$0]  %s1723_s0, 1024, %s1574_s18, [#allocation3], %s1546_s27, %s1546_s27, %s1547_s28  }
  0x22   :  { %s1548_s14 = smov [#allocation6]   ;;  %s1518_s19 = scalar_lea.hbm %s1725_s2, 3072 }
  0x23   :  { %s40_s15 = sshll.u32 %s1548_s14, 4  ;;  %p1519_p2 = scmp.ne.s32.totalorder %s1725_s2, %s1518_s19  ;;  %s41_s15 = int_to_ptr.vmem [resolvable:$true] %s40_s15 }
  0x24   :  { %p1522_p3 = scmp.lt.u32.totalorder %s1518_s19, %s1725_s2 }
  0x26   :  { %p1524_p4 = pnand %p1522_p3, %p1519_p2 }
  0x28   :  { %1527 = shalt.err (!%p1524_p4)
}
  0x29   :  { %s1528_s24 = scalar_lea.vmem %s41_s15, 3072  ;;  %p1533_p6 = scmp.lt.s32.totalorder %s41_s15, %s41_s15 }
  0x2a   :  { %p1529_p5 = scmp.ne.s32.totalorder %s41_s15, %s1528_s24  ;;  %p1534_p7 = scmp.lt.s32.totalorder %s1528_s24, %s1528_s24 }
  0x2c   :  { %p1535_p8 = por %p1534_p7, %p1533_p6 }
  0x2e   :  { %p1536_p9 = pnand %p1535_p8, %p1529_p5 }
  0x30   :  { %1539 = shalt.err (!%p1536_p9)
}
  0x31   :  { %46 = dma.hbm_to_vmem [thread:$0]  %s1725_s2, 3072, %s41_s15, [#allocation5], %s1546_s27, %s1546_s27, %s1547_s28  }
  0x32   :  { %1540 = dma.done.wait [#allocation3], 1024  }
  0x33   :  { %1541 = vsyncadd [#allocation3], 4294966272 }
  0x34   :  { %1542 = dma.done.wait [#allocation5], 4096  }
  0x35   :  { %1543 = vsyncadd [#allocation5], 4294963200  ;;  %v1434_v0 = vld [vmem:[#allocation6] sm:$0xff]   ;;  %v1435_v1 = vld [vmem:[#allocation6 + $0x8] sm:$0xff]  }
  0x36   :  { %1237 = vmatprep.subr.bf16.mxu0 %v1434_v0  ;;  %v1436_v2 = vld [vmem:[#allocation6 + $0x10] sm:$0xff]   ;;  %v1437_v3 = vld [vmem:[#allocation6 + $0x18] sm:$0xff]   ;;  %v1442_v4 = vld [vmem:[#allocation2] sm:$0xff]  }
  0x37   :  { %1238 = vmatpush3.bf16.msra.mxu0 %v1434_v0  ;;  %1253 = vmatprep.mubr.bf16.mxu0 %v1442_v4  ;;  %v1438_v5 = vld [vmem:[#allocation6 + $0x20] sm:$0xff]   ;;  %v1439_v6 = vld [vmem:[#allocation6 + $0x28] sm:$0xff]   ;;  %v1440_v7 = vld [vmem:[#allocation6 + $0x30] sm:$0xff]  }
  0x38   :  { %1239 = vmatprep.subr.bf16.mxu0 %v1435_v1  ;;  %v1441_v8 = vld [vmem:[#allocation6 + $0x38] sm:$0xff]   ;;  %v1443_v9 = vld [vmem:[#allocation2 + $0x8] sm:$0xff]   ;;  %v1444_v10 = vld [vmem:[#allocation2 + $0x10] sm:$0xff]  }
  0x39   :  { %v1445_v11 = vld [vmem:[#allocation2 + $0x18] sm:$0xff]   ;;  %v1446_v12 = vld [vmem:[#allocation2 + $0x20] sm:$0xff]   ;;  %v1447_v13 = vld [vmem:[#allocation2 + $0x28] sm:$0xff]  }
  0x3a   :  { %v1448_v14 = vld [vmem:[#allocation2 + $0x30] sm:$0xff]   ;;  %v1449_v15 = vld [vmem:[#allocation2 + $0x38] sm:$0xff]   ;;  %v1626_v16 = vld [vmem:[#allocation4] sm:$0xff]  }
  0x3b   :  { %1240 = vmatpush3.bf16.msra.mxu0 %v1435_v1  ;;  %1285 = vmatprep.mubr.bf16.mxu1 %v1626_v16  ;;  %v1458_v17 = vld [vmem:[#allocation6 + $0x40] sm:$0xff]   ;;  %v1459_v18 = vld [vmem:[#allocation6 + $0x48] sm:$0xff]   ;;  %v1460_v19 = vld [vmem:[#allocation6 + $0x50] sm:$0xff]  }
  0x3c   :  { %1241 = vmatprep.subr.bf16.mxu0 %v1436_v2  ;;  %v1461_v20 = vld [vmem:[#allocation6 + $0x58] sm:$0xff]   ;;  %v1462_v21 = vld [vmem:[#allocation6 + $0x60] sm:$0xff]   ;;  %v1463_v22 = vld [vmem:[#allocation6 + $0x68] sm:$0xff]  }
  0x3d   :  { %v1629_v47 = vld [vmem:[#allocation4 + $0x8] sm:$0xff]   ;;  %v1631_v48 = vld [vmem:[#allocation4 + $0x10] sm:$0xff]   ;;  %v1635_v49 = vld [vmem:[#allocation4 + $0x18] sm:$0xff]  }
  0x3e   :  { %v1637_v50 = vld [vmem:[#allocation4 + $0x20] sm:$0xff]   ;;  %v1641_v51 = vld [vmem:[#allocation4 + $0x28] sm:$0xff]   ;;  %v1643_v52 = vld [vmem:[#allocation4 + $0x30] sm:$0xff]  }
  0x3f   :  { %1242 = vmatpush3.bf16.msra.mxu0 %v1436_v2  ;;  %v1647_v53 = vld [vmem:[#allocation4 + $0x38] sm:$0xff]   ;;  %v1464_v54 = vld [vmem:[#allocation6 + $0x70] sm:$0xff]   ;;  %v1112_v56 = vld [vmem:[%s1726_s3] ss:$0 sm:$0xff] }
  0x40   :  { %1243 = vmatprep.subr.bf16.mxu0 %v1437_v3  ;;  %v1465_v55 = vld [vmem:[#allocation6 + $0x78] sm:$0xff]  }
  0x43   :  { %1244 = vmatpush3.bf16.msra.mxu0 %v1437_v3 }
  0x44   :  { %1245 = vmatprep.subr.bf16.mxu0 %v1438_v5 }
  0x47   :  { %1246 = vmatpush3.bf16.msra.mxu0 %v1438_v5 }
  0x48   :  { %1247 = vmatprep.subr.bf16.mxu0 %v1439_v6 }
  0x4b   :  { %1248 = vmatpush3.bf16.msra.mxu0 %v1439_v6 }
  0x4c   :  { %1249 = vmatprep.subr.bf16.mxu0 %v1440_v7 }
  0x4f   :  { %1250 = vmatpush3.bf16.msra.mxu0 %v1440_v7 }
  0x50   :  { %1251 = vmatprep.subr.bf16.mxu0 %v1441_v8 }
  0x53   :  { %1252 = vmatpush3.bf16.msra.mxu0 %v1441_v8 }
  0x54   :  { %1301 = vmatprep.subr.bf16.mxu0 %v1458_v17 }
  0x56   :  { %1254 = vmatmul.mubr.bf16.vlgmr.msra.gmra.mrb[0].mxu0 %v1443_v9 }
  0x57   :  { %1257 = vmatprep.mubr.bf16.mxu0 %v1444_v10  ;;  %1302 = vmatpush3.bf16.msra.mxu0 %v1458_v17 }
  0x58   :  { %1303 = vmatprep.subr.bf16.mxu0 %v1459_v18 }
  0x5b   :  { %1304 = vmatpush3.bf16.msra.mxu0 %v1459_v18 }
  0x5c   :  { %1305 = vmatprep.subr.bf16.mxu0 %v1460_v19 }
  0x5e   :  { %1258 = vmatmul.mubr.bf16.gmra.mrb[4].mxu0 %v1445_v11 }
  0x5f   :  { %1261 = vmatprep.mubr.bf16.mxu0 %v1446_v12  ;;  %1306 = vmatpush3.bf16.msra.mxu0 %v1460_v19 }
  0x60   :  { %1307 = vmatprep.subr.bf16.mxu0 %v1461_v20 }
  0x63   :  { %1308 = vmatpush3.bf16.msra.mxu0 %v1461_v20 }
  0x64   :  { %1309 = vmatprep.subr.bf16.mxu0 %v1462_v21 }
  0x66   :  { %1262 = vmatmul.mubr.bf16.gmra.mrb[8].mxu0 %v1447_v13 }
  0x67   :  { %1265 = vmatprep.mubr.bf16.mxu0 %v1448_v14  ;;  %1310 = vmatpush3.bf16.msra.mxu0 %v1462_v21 }
  0x68   :  { %1311 = vmatprep.subr.bf16.mxu0 %v1463_v22 }
  0x6b   :  { %1312 = vmatpush3.bf16.msra.mxu0 %v1463_v22 }
  0x6c   :  { %1313 = vmatprep.subr.bf16.mxu0 %v1464_v54 }
  0x6e   :  { %1266 = vmatmul.mubr.bf16.gmra.mrb[12].mxu0 %v1449_v15 }
  0x6f   :  { %1314 = vmatpush3.bf16.msra.mxu0 %v1464_v54 }
  0x70   :  { %1315 = vmatprep.subr.bf16.mxu0 %v1465_v55 }
  0x73   :  { %1316 = vmatpush3.bf16.msra.mxu0 %v1465_v55 }
 0x129   :  { %v1255_v23 = vpop.f32.mrb[0].mxu0 }
 0x12a   :  { %v237_v24 = vpop.f32.mrb[1].mxu0 }
 0x12b   :  { %v1256_v25 = vpop.f32.mrb[2].mxu0 }
 0x12c   :  { %v301_v26 = vpack.c.bf16 %v1256_v25, %v1255_v23  ;;  %v240_v27 = vpop.f32.mrb[3].mxu0 }
 0x12d   :  { %v300_v28 = vpack.c.bf16 %v240_v27, %v237_v24 }
 0x12f   :  { %1269 = vmatprep.subr.bf16.mxu1 %v300_v28 }
 0x130   :  { %1270 = vmatpush3.bf16.msra.mxu1 %v300_v28 }
 0x131   :  { %v1259_v29 = vpop.f32.mrb[4].mxu0  ;;  %1271 = vmatprep.subr.bf16.mxu1 %v301_v26 }
 0x132   :  { %v253_v30 = vpop.f32.mrb[5].mxu0 }
 0x133   :  { %v1260_v31 = vpop.f32.mrb[6].mxu0 }
 0x134   :  { %v303_v32 = vpack.c.bf16 %v1260_v31, %v1259_v29  ;;  %v256_v33 = vpop.f32.mrb[7].mxu0  ;;  %1272 = vmatpush3.bf16.msra.mxu1 %v301_v26 }
 0x135   :  { %v302_v34 = vpack.c.bf16 %v256_v33, %v253_v30 }
 0x137   :  { %1273 = vmatprep.subr.bf16.mxu1 %v302_v34 }
 0x138   :  { %1274 = vmatpush3.bf16.msra.mxu1 %v302_v34 }
 0x139   :  { %v1263_v35 = vpop.f32.mrb[8].mxu0  ;;  %1275 = vmatprep.subr.bf16.mxu1 %v303_v32 }
 0x13a   :  { %v269_v36 = vpop.f32.mrb[9].mxu0 }
 0x13b   :  { %v1264_v37 = vpop.f32.mrb[10].mxu0 }
 0x13c   :  { %v305_v38 = vpack.c.bf16 %v1264_v37, %v1263_v35  ;;  %v272_v39 = vpop.f32.mrb[11].mxu0  ;;  %1276 = vmatpush3.bf16.msra.mxu1 %v303_v32 }
 0x13d   :  { %v304_v40 = vpack.c.bf16 %v272_v39, %v269_v36 }
 0x13f   :  { %1277 = vmatprep.subr.bf16.mxu1 %v304_v40 }
 0x140   :  { %1278 = vmatpush3.bf16.msra.mxu1 %v304_v40 }
 0x141   :  { %v1267_v41 = vpop.f32.mrb[12].mxu0  ;;  %1279 = vmatprep.subr.bf16.mxu1 %v305_v38 }
 0x142   :  { %v285_v42 = vpop.f32.mrb[13].mxu0 }
 0x143   :  { %v1268_v43 = vpop.f32.mrb[14].mxu0 }
 0x144   :  { %v307_v44 = vpack.c.bf16 %v1268_v43, %v1267_v41  ;;  %v288_v45 = vpop.f32.mrb[15].mxu0  ;;  %1280 = vmatpush3.bf16.msra.mxu1 %v305_v38 }
 0x145   :  { %v306_v46 = vpack.c.bf16 %v288_v45, %v285_v42 }
 0x147   :  { %1281 = vmatprep.subr.bf16.mxu1 %v306_v46 }
 0x148   :  { %1282 = vmatpush3.bf16.msra.mxu1 %v306_v46 }
 0x149   :  { %1283 = vmatprep.subr.bf16.mxu1 %v307_v44 }
 0x14c   :  { %1284 = vmatpush3.bf16.msra.mxu1 %v307_v44 }
 0x14f   :  { %1286 = vmatmul.mubr.bf16.vlgmr.msra.gmra.mrb[0].mxu1 %v1629_v47 }
 0x150   :  { %1289 = vmatprep.mubr.bf16.mxu1 %v1631_v48 }
 0x157   :  { %1290 = vmatmul.mubr.bf16.gmra.mrb[4].mxu1 %v1635_v49 }
 0x158   :  { %1293 = vmatprep.mubr.bf16.mxu1 %v1637_v50 }
 0x15f   :  { %1294 = vmatmul.mubr.bf16.gmra.mrb[8].mxu1 %v1641_v51 }
 0x160   :  { %1297 = vmatprep.mubr.bf16.mxu1 %v1643_v52 }
 0x167   :  { %1298 = vmatmul.mubr.bf16.gmra.mrb[12].mxu1 %v1647_v53 }
 0x168   :  { %1349 = vmatprep.mubr.bf16.mxu1 %v1626_v16 }
 0x222   :  { %v1287_v57 = vpop.f32.mrb[0].mxu1 }
 0x223   :  { %v406_v58 = vadd.f32 %v1287_v57, %v1112_v56  ;;  %v397_v59 = vpop.f32.mrb[1].mxu1 }
 0x224   :  { %v398_v60 = vadd.f32 %v1112_v56, %v397_v59  ;;  %v1288_v61 = vpop.f32.mrb[2].mxu1  ;;  %v1467_v59 = vld [vmem:[#allocation6 + $0x88] sm:$0xff]  }
 0x225   :  { %v409_v62 = vadd.f32 %v1288_v61, %v1112_v56  ;;  %v400_v63 = vpop.f32.mrb[3].mxu1  ;;  %v462_v1 = vmax.f32 %v406_v58, 0.0  ;;  %v1466_v58 = vld [vmem:[#allocation6 + $0x80] sm:$0xff]   ;;  %v1469_v61 = vld [vmem:[#allocation6 + $0x98] sm:$0xff]  }
 0x226   :  { %v401_v0 = vadd.f32 %v1112_v56, %v400_v63  ;;  %v460_v3 = vmax.f32 %v398_v60, 0.0  ;;  %1365 = vmatprep.subr.bf16.mxu0 %v1466_v58  ;;  %v1468_v60 = vld [vmem:[#allocation6 + $0x90] sm:$0xff]  }
 0x227   :  { %v463_v2 = vmax.f32 %v409_v62, 0.0  ;;  %v1471_v62 = vld [vmem:[#allocation6 + $0xa8] sm:$0xff]  }
 0x228   :  { %v461_v4 = vmax.f32 %v401_v0, 0.0 }
 0x229   :  { %v477_v5 = vpack.c.bf16 %v463_v2, %v462_v1 }
 0x22a   :  { %v476_v6 = vpack.c.bf16 %v461_v4, %v460_v3  ;;  %v1291_v7 = vpop.f32.mrb[4].mxu1 }
 0x22b   :  { %v422_v8 = vadd.f32 %v1291_v7, %v1112_v56  ;;  %v413_v9 = vpop.f32.mrb[5].mxu1 }
 0x22c   :  { %v414_v10 = vadd.f32 %v1112_v56, %v413_v9  ;;  %v1292_v11 = vpop.f32.mrb[6].mxu1  ;;  %1317 = vmatprep.mubr.bf16.mxu0 %v476_v6 }
 0x22d   :  { %v425_v12 = vadd.f32 %v1292_v11, %v1112_v56  ;;  %v416_v13 = vpop.f32.mrb[7].mxu1  ;;  %1318 = vmatmul.mubr.bf16.vlgmr.msra.gmra.mrb[16].mxu0 %v477_v5  ;;  %v466_v15 = vmax.f32 %v422_v8, 0.0 }
 0x22e   :  { %v417_v14 = vadd.f32 %v1112_v56, %v416_v13  ;;  %v464_v18 = vmax.f32 %v414_v10, 0.0  ;;  %1366 = vmatpush3.bf16.msra.mxu0 %v1466_v58 }
 0x22f   :  { %v467_v17 = vmax.f32 %v425_v12, 0.0  ;;  %1367 = vmatprep.subr.bf16.mxu0 %v1467_v59 }
 0x230   :  { %v465_v19 = vmax.f32 %v417_v14, 0.0 }
 0x231   :  { %v479_v20 = vpack.c.bf16 %v467_v17, %v466_v15 }
 0x232   :  { %v478_v21 = vpack.c.bf16 %v465_v19, %v464_v18  ;;  %v1295_v22 = vpop.f32.mrb[8].mxu1  ;;  %1368 = vmatpush3.bf16.msra.mxu0 %v1467_v59 }
 0x233   :  { %v438_v23 = vadd.f32 %v1295_v22, %v1112_v56  ;;  %v429_v24 = vpop.f32.mrb[9].mxu1  ;;  %1369 = vmatprep.subr.bf16.mxu0 %v1468_v60 }
 0x234   :  { %v430_v25 = vadd.f32 %v1112_v56, %v429_v24  ;;  %v1296_v26 = vpop.f32.mrb[10].mxu1  ;;  %1321 = vmatprep.mubr.bf16.mxu0 %v478_v21  ;;  %v1472_v24 = vld [vmem:[#allocation6 + $0xb0] sm:$0xff]  }
 0x235   :  { %v441_v27 = vadd.f32 %v1296_v26, %v1112_v56  ;;  %v432_v28 = vpop.f32.mrb[11].mxu1  ;;  %1322 = vmatmul.mubr.bf16.gmra.mrb[20].mxu0 %v479_v20  ;;  %v470_v30 = vmax.f32 %v438_v23, 0.0  ;;  %v1130_v26 = vld [vmem:[%s1726_s3 + $0x1] ss:$0 sm:$0xff] }
 0x236   :  { %v433_v29 = vadd.f32 %v1112_v56, %v432_v28  ;;  %v468_v32 = vmax.f32 %v430_v25, 0.0  ;;  %1370 = vmatpush3.bf16.msra.mxu0 %v1468_v60  ;;  %v1473_v25 = vld [vmem:[#allocation6 + $0xb8] sm:$0xff]  }
 0x237   :  { %v471_v31 = vmax.f32 %v441_v27, 0.0  ;;  %1371 = vmatprep.subr.bf16.mxu0 %v1469_v61 }
 0x238   :  { %v469_v33 = vmax.f32 %v433_v29, 0.0 }
 0x239   :  { %v481_v34 = vpack.c.bf16 %v471_v31, %v470_v30 }
 0x23a   :  { %v480_v35 = vpack.c.bf16 %v469_v33, %v468_v32  ;;  %v1299_v36 = vpop.f32.mrb[12].mxu1  ;;  %1372 = vmatpush3.bf16.msra.mxu0 %v1469_v61 }
 0x23b   :  { %v454_v37 = vadd.f32 %v1299_v36, %v1112_v56  ;;  %v445_v38 = vpop.f32.mrb[13].mxu1 }
 0x23c   :  { %v446_v39 = vadd.f32 %v1112_v56, %v445_v38  ;;  %v1300_v40 = vpop.f32.mrb[14].mxu1  ;;  %1325 = vmatprep.mubr.bf16.mxu0 %v480_v35 }
 0x23d   :  { %v457_v41 = vadd.f32 %v1300_v40, %v1112_v56  ;;  %v448_v42 = vpop.f32.mrb[15].mxu1  ;;  %1326 = vmatmul.mubr.bf16.gmra.mrb[24].mxu0 %v481_v34  ;;  %v474_v44 = vmax.f32 %v454_v37, 0.0 }
 0x23e   :  { %v449_v43 = vadd.f32 %v1112_v56, %v448_v42  ;;  %v472_v46 = vmax.f32 %v446_v39, 0.0  ;;  %v1470_v56 = vld [vmem:[#allocation6 + $0xa0] sm:$0xff]  }
 0x23f   :  { %v475_v45 = vmax.f32 %v457_v41, 0.0  ;;  %1373 = vmatprep.subr.bf16.mxu0 %v1470_v56 }
 0x240   :  { %v473_v54 = vmax.f32 %v449_v43, 0.0  ;;  %1374 = vmatpush3.bf16.msra.mxu0 %v1470_v56 }
 0x241   :  { %v483_v55 = vpack.c.bf16 %v475_v45, %v474_v44  ;;  %1375 = vmatprep.subr.bf16.mxu0 %v1471_v62 }
 0x242   :  { %v482_v57 = vpack.c.bf16 %v473_v54, %v472_v46 }
 0x244   :  { %1329 = vmatprep.mubr.bf16.mxu0 %v482_v57  ;;  %1376 = vmatpush3.bf16.msra.mxu0 %v1471_v62 }
 0x245   :  { %1330 = vmatmul.mubr.bf16.gmra.mrb[28].mxu0 %v483_v55  ;;  %1377 = vmatprep.subr.bf16.mxu0 %v1472_v24 }
 0x248   :  { %1378 = vmatpush3.bf16.msra.mxu0 %v1472_v24 }
 0x249   :  { %1379 = vmatprep.subr.bf16.mxu0 %v1473_v25 }
 0x24c   :  { %1380 = vmatpush3.bf16.msra.mxu0 %v1473_v25 }
 0x300   :  { %v1319_v63 = vpop.f32.mrb[16].mxu0 }
 0x301   :  { %v583_v0 = vpop.f32.mrb[17].mxu0 }
 0x302   :  { %v1320_v1 = vpop.f32.mrb[18].mxu0 }
 0x303   :  { %v647_v2 = vpack.c.bf16 %v1320_v1, %v1319_v63  ;;  %v586_v3 = vpop.f32.mrb[19].mxu0 }
 0x304   :  { %v646_v4 = vpack.c.bf16 %v586_v3, %v583_v0 }
 0x306   :  { %1333 = vmatprep.subr.bf16.mxu1 %v646_v4 }
 0x307   :  { %1334 = vmatpush3.bf16.msra.mxu1 %v646_v4 }
 0x308   :  { %v1323_v5 = vpop.f32.mrb[20].mxu0  ;;  %1335 = vmatprep.subr.bf16.mxu1 %v647_v2 }
 0x309   :  { %v599_v6 = vpop.f32.mrb[21].mxu0 }
 0x30a   :  { %v1324_v7 = vpop.f32.mrb[22].mxu0 }
 0x30b   :  { %v649_v8 = vpack.c.bf16 %v1324_v7, %v1323_v5  ;;  %v602_v9 = vpop.f32.mrb[23].mxu0  ;;  %1336 = vmatpush3.bf16.msra.mxu1 %v647_v2 }
 0x30c   :  { %v648_v10 = vpack.c.bf16 %v602_v9, %v599_v6 }
 0x30e   :  { %1337 = vmatprep.subr.bf16.mxu1 %v648_v10 }
 0x30f   :  { %1338 = vmatpush3.bf16.msra.mxu1 %v648_v10 }
 0x310   :  { %v1327_v11 = vpop.f32.mrb[24].mxu0  ;;  %1339 = vmatprep.subr.bf16.mxu1 %v649_v8 }
 0x311   :  { %v615_v12 = vpop.f32.mrb[25].mxu0 }
 0x312   :  { %v1328_v13 = vpop.f32.mrb[26].mxu0 }
 0x313   :  { %v651_v14 = vpack.c.bf16 %v1328_v13, %v1327_v11  ;;  %v618_v15 = vpop.f32.mrb[27].mxu0  ;;  %1340 = vmatpush3.bf16.msra.mxu1 %v649_v8 }
 0x314   :  { %v650_v17 = vpack.c.bf16 %v618_v15, %v615_v12 }
 0x316   :  { %1341 = vmatprep.subr.bf16.mxu1 %v650_v17 }
 0x317   :  { %1342 = vmatpush3.bf16.msra.mxu1 %v650_v17 }
 0x318   :  { %v1331_v18 = vpop.f32.mrb[28].mxu0  ;;  %1343 = vmatprep.subr.bf16.mxu1 %v651_v14 }
 0x319   :  { %v631_v19 = vpop.f32.mrb[29].mxu0 }
 0x31a   :  { %v1332_v20 = vpop.f32.mrb[30].mxu0 }
 0x31b   :  { %v653_v21 = vpack.c.bf16 %v1332_v20, %v1331_v18  ;;  %v634_v22 = vpop.f32.mrb[31].mxu0  ;;  %1344 = vmatpush3.bf16.msra.mxu1 %v651_v14 }
 0x31c   :  { %v652_v23 = vpack.c.bf16 %v634_v22, %v631_v19 }
 0x31e   :  { %1345 = vmatprep.subr.bf16.mxu1 %v652_v23 }
 0x31f   :  { %1346 = vmatpush3.bf16.msra.mxu1 %v652_v23 }
 0x320   :  { %1347 = vmatprep.subr.bf16.mxu1 %v653_v21 }
 0x323   :  { %1348 = vmatpush3.bf16.msra.mxu1 %v653_v21 }
 0x326   :  { %1350 = vmatmul.mubr.bf16.vlgmr.msra.gmra.mrb[16].mxu1 %v1629_v47 }
 0x327   :  { %1353 = vmatprep.mubr.bf16.mxu1 %v1631_v48 }
 0x32e   :  { %1354 = vmatmul.mubr.bf16.gmra.mrb[20].mxu1 %v1635_v49 }
 0x32f   :  { %1357 = vmatprep.mubr.bf16.mxu1 %v1637_v50 }
 0x336   :  { %1358 = vmatmul.mubr.bf16.gmra.mrb[24].mxu1 %v1641_v51 }
 0x337   :  { %1361 = vmatprep.mubr.bf16.mxu1 %v1643_v52 }
 0x33e   :  { %1362 = vmatmul.mubr.bf16.gmra.mrb[28].mxu1 %v1647_v53 }
 0x33f   :  { %1413 = vmatprep.mubr.bf16.mxu1 %v1626_v16 }
 0x3f9   :  { %v1351_v27 = vpop.f32.mrb[16].mxu1 }
 0x3fa   :  { %v705_v28 = vadd.f32 %v1351_v27, %v1130_v26  ;;  %v696_v29 = vpop.f32.mrb[17].mxu1 }
 0x3fb   :  { %v697_v30 = vadd.f32 %v1130_v26, %v696_v29  ;;  %v1352_v31 = vpop.f32.mrb[18].mxu1 }
 0x3fc   :  { %v708_v32 = vadd.f32 %v1352_v31, %v1130_v26  ;;  %v699_v33 = vpop.f32.mrb[19].mxu1  ;;  %v761_v35 = vmax.f32 %v705_v28, 0.0 }
 0x3fd   :  { %v700_v34 = vadd.f32 %v1130_v26, %v699_v33  ;;  %v759_v36 = vmax.f32 %v697_v30, 0.0 }
 0x3fe   :  { %v762_v16 = vmax.f32 %v708_v32, 0.0 }
 0x3ff   :  { %v760_v37 = vmax.f32 %v700_v34, 0.0 }
 0x400   :  { %v776_v38 = vpack.c.bf16 %v762_v16, %v761_v35 }
 0x401   :  { %v775_v39 = vpack.c.bf16 %v760_v37, %v759_v36  ;;  %v1355_v40 = vpop.f32.mrb[20].mxu1 }
 0x402   :  { %v721_v41 = vadd.f32 %v1355_v40, %v1130_v26  ;;  %v712_v42 = vpop.f32.mrb[21].mxu1 }
 0x403   :  { %v713_v43 = vadd.f32 %v1130_v26, %v712_v42  ;;  %v1356_v44 = vpop.f32.mrb[22].mxu1  ;;  %1381 = vmatprep.mubr.bf16.mxu0 %v775_v39 }
 0x404   :  { %v724_v45 = vadd.f32 %v1356_v44, %v1130_v26  ;;  %v715_v46 = vpop.f32.mrb[23].mxu1  ;;  %1382 = vmatmul.mubr.bf16.vlgmr.msra.gmra.mrb[32].mxu0 %v776_v38  ;;  %v765_v55 = vmax.f32 %v721_v41, 0.0 }
 0x405   :  { %v716_v54 = vadd.f32 %v1130_v26, %v715_v46  ;;  %v763_v58 = vmax.f32 %v713_v43, 0.0 }
 0x406   :  { %v766_v57 = vmax.f32 %v724_v45, 0.0 }
 0x407   :  { %v764_v59 = vmax.f32 %v716_v54, 0.0 }
 0x408   :  { %v778_v60 = vpack.c.bf16 %v766_v57, %v765_v55  ;;  %v1140_v57 = vld [vmem:[%s1726_s3 + $0x2] ss:$0 sm:$0xff] }
 0x409   :  { %v777_v61 = vpack.c.bf16 %v764_v59, %v763_v58  ;;  %v1359_v56 = vpop.f32.mrb[24].mxu1 }
 0x40a   :  { %v737_v62 = vadd.f32 %v1359_v56, %v1130_v26  ;;  %v728_v63 = vpop.f32.mrb[25].mxu1 }
 0x40b   :  { %v729_v0 = vadd.f32 %v1130_v26, %v728_v63  ;;  %v1360_v1 = vpop.f32.mrb[26].mxu1  ;;  %1385 = vmatprep.mubr.bf16.mxu0 %v777_v61 }
 0x40c   :  { %v740_v2 = vadd.f32 %v1360_v1, %v1130_v26  ;;  %v731_v3 = vpop.f32.mrb[27].mxu1  ;;  %1386 = vmatmul.mubr.bf16.gmra.mrb[36].mxu0 %v778_v60  ;;  %v769_v5 = vmax.f32 %v737_v62, 0.0 }
 0x40d   :  { %v732_v4 = vadd.f32 %v1130_v26, %v731_v3  ;;  %v767_v7 = vmax.f32 %v729_v0, 0.0 }
 0x40e   :  { %v770_v6 = vmax.f32 %v740_v2, 0.0 }
 0x40f   :  { %v768_v8 = vmax.f32 %v732_v4, 0.0 }
 0x410   :  { %v780_v9 = vpack.c.bf16 %v770_v6, %v769_v5 }
 0x411   :  { %v779_v10 = vpack.c.bf16 %v768_v8, %v767_v7  ;;  %v1363_v11 = vpop.f32.mrb[28].mxu1 }
 0x412   :  { %v753_v12 = vadd.f32 %v1363_v11, %v1130_v26  ;;  %v744_v13 = vpop.f32.mrb[29].mxu1 }
 0x413   :  { %v745_v14 = vadd.f32 %v1130_v26, %v744_v13  ;;  %v1364_v15 = vpop.f32.mrb[30].mxu1  ;;  %1389 = vmatprep.mubr.bf16.mxu0 %v779_v10 }
 0x414   :  { %v756_v17 = vadd.f32 %v1364_v15, %v1130_v26  ;;  %v747_v18 = vpop.f32.mrb[31].mxu1  ;;  %1390 = vmatmul.mubr.bf16.gmra.mrb[40].mxu0 %v780_v9  ;;  %v773_v20 = vmax.f32 %v753_v12, 0.0 }
 0x415   :  { %v748_v19 = vadd.f32 %v1130_v26, %v747_v18  ;;  %v771_v22 = vmax.f32 %v745_v14, 0.0 }
 0x416   :  { %v774_v21 = vmax.f32 %v756_v17, 0.0 }
 0x417   :  { %v772_v23 = vmax.f32 %v748_v19, 0.0 }
 0x418   :  { %v782_v24 = vpack.c.bf16 %v774_v21, %v773_v20 }
 0x419   :  { %v781_v25 = vpack.c.bf16 %v772_v23, %v771_v22 }
 0x41b   :  { %1393 = vmatprep.mubr.bf16.mxu0 %v781_v25 }
 0x41c   :  { %1394 = vmatmul.mubr.bf16.gmra.mrb[44].mxu0 %v782_v24 }
 0x4d7   :  { %v1383_v27 = vpop.f32.mrb[32].mxu0 }
 0x4d8   :  { %v882_v28 = vpop.f32.mrb[33].mxu0 }
 0x4d9   :  { %v1384_v29 = vpop.f32.mrb[34].mxu0 }
 0x4da   :  { %v946_v30 = vpack.c.bf16 %v1384_v29, %v1383_v27  ;;  %v885_v31 = vpop.f32.mrb[35].mxu0 }
 0x4db   :  { %v945_v32 = vpack.c.bf16 %v885_v31, %v882_v28 }
 0x4dd   :  { %1397 = vmatprep.subr.bf16.mxu1 %v945_v32 }
 0x4de   :  { %1398 = vmatpush3.bf16.msra.mxu1 %v945_v32 }
 0x4df   :  { %v1387_v33 = vpop.f32.mrb[36].mxu0  ;;  %1399 = vmatprep.subr.bf16.mxu1 %v946_v30 }
 0x4e0   :  { %v898_v34 = vpop.f32.mrb[37].mxu0 }
 0x4e1   :  { %v1388_v26 = vpop.f32.mrb[38].mxu0 }
 0x4e2   :  { %v948_v35 = vpack.c.bf16 %v1388_v26, %v1387_v33  ;;  %v901_v16 = vpop.f32.mrb[39].mxu0  ;;  %1400 = vmatpush3.bf16.msra.mxu1 %v946_v30 }
 0x4e3   :  { %v947_v36 = vpack.c.bf16 %v901_v16, %v898_v34 }
 0x4e5   :  { %1401 = vmatprep.subr.bf16.mxu1 %v947_v36 }
 0x4e6   :  { %1402 = vmatpush3.bf16.msra.mxu1 %v947_v36 }
 0x4e7   :  { %v1391_v37 = vpop.f32.mrb[40].mxu0  ;;  %1403 = vmatprep.subr.bf16.mxu1 %v948_v35 }
 0x4e8   :  { %v914_v38 = vpop.f32.mrb[41].mxu0 }
 0x4e9   :  { %v1392_v39 = vpop.f32.mrb[42].mxu0 }
 0x4ea   :  { %v950_v40 = vpack.c.bf16 %v1392_v39, %v1391_v37  ;;  %v917_v41 = vpop.f32.mrb[43].mxu0  ;;  %1404 = vmatpush3.bf16.msra.mxu1 %v948_v35 }
 0x4eb   :  { %v949_v42 = vpack.c.bf16 %v917_v41, %v914_v38 }
 0x4ed   :  { %1405 = vmatprep.subr.bf16.mxu1 %v949_v42 }
 0x4ee   :  { %1406 = vmatpush3.bf16.msra.mxu1 %v949_v42 }
 0x4ef   :  { %v1395_v43 = vpop.f32.mrb[44].mxu0  ;;  %1407 = vmatprep.subr.bf16.mxu1 %v950_v40 }
 0x4f0   :  { %v930_v44 = vpop.f32.mrb[45].mxu0 }
 0x4f1   :  { %v1396_v45 = vpop.f32.mrb[46].mxu0 }
 0x4f2   :  { %v952_v46 = vpack.c.bf16 %v1396_v45, %v1395_v43  ;;  %v933_v54 = vpop.f32.mrb[47].mxu0  ;;  %1408 = vmatpush3.bf16.msra.mxu1 %v950_v40 }
 0x4f3   :  { %v951_v55 = vpack.c.bf16 %v933_v54, %v930_v44 }
 0x4f5   :  { %1409 = vmatprep.subr.bf16.mxu1 %v951_v55 }
 0x4f6   :  { %1410 = vmatpush3.bf16.msra.mxu1 %v951_v55 }
 0x4f7   :  { %1411 = vmatprep.subr.bf16.mxu1 %v952_v46 }
 0x4fa   :  { %1412 = vmatpush3.bf16.msra.mxu1 %v952_v46 }
 0x4fd   :  { %1414 = vmatmul.mubr.bf16.vlgmr.msra.gmra.mrb[32].mxu1 %v1629_v47 }
 0x4fe   :  { %1417 = vmatprep.mubr.bf16.mxu1 %v1631_v48 }
 0x505   :  { %1418 = vmatmul.mubr.bf16.gmra.mrb[36].mxu1 %v1635_v49 }
 0x506   :  { %1421 = vmatprep.mubr.bf16.mxu1 %v1637_v50 }
 0x50d   :  { %1422 = vmatmul.mubr.bf16.gmra.mrb[40].mxu1 %v1641_v51 }
 0x50e   :  { %1425 = vmatprep.mubr.bf16.mxu1 %v1643_v52 }
 0x515   :  { %1426 = vmatmul.mubr.bf16.gmra.mrb[44].mxu1 %v1647_v53 }
 0x5d0   :  { %v1415_v58 = vpop.f32.mrb[32].mxu1 }
 0x5d1   :  { %v1004_v59 = vadd.f32 %v1415_v58, %v1140_v57  ;;  %v995_v60 = vpop.f32.mrb[33].mxu1 }
 0x5d2   :  { %v996_v47 = vadd.f32 %v1140_v57, %v995_v60  ;;  %v1416_v61 = vpop.f32.mrb[34].mxu1 }
 0x5d3   :  { %v1060_v48 = vmax.f32 %v1004_v59, 0.0  ;;  %v1007_v56 = vadd.f32 %v1416_v61, %v1140_v57  ;;  %v998_v49 = vpop.f32.mrb[35].mxu1 }
 0x5d4   :  { %v1058_v62 = vmax.f32 %v996_v47, 0.0  ;;  %v999_v50 = vadd.f32 %v1140_v57, %v998_v49 }
 0x5d5   :  { %1076 = vst [vmem:[%s1727_s4 + $0x10] sm:$0xff] %v1060_v48  ;;  %v1061_v51 = vmax.f32 %v1007_v56, 0.0 }
 0x5d6   :  { %1074 = vst [vmem:[%s1727_s4] sm:$0xff] %v1058_v62  ;;  %v1059_v52 = vmax.f32 %v999_v50, 0.0 }
 0x5d7   :  { %1077 = vst [vmem:[%s1727_s4 + $0x18] sm:$0xff] %v1061_v51 }
 0x5d8   :  { %1075 = vst [vmem:[%s1727_s4 + $0x8] sm:$0xff] %v1059_v52  ;;  %v1419_v53 = vpop.f32.mrb[36].mxu1 }
 0x5d9   :  { %v1020_v63 = vadd.f32 %v1419_v53, %v1140_v57  ;;  %v1011_v0 = vpop.f32.mrb[37].mxu1 }
 0x5da   :  { %v1012_v1 = vadd.f32 %v1140_v57, %v1011_v0  ;;  %v1420_v2 = vpop.f32.mrb[38].mxu1 }
 0x5db   :  { %v1064_v3 = vmax.f32 %v1020_v63, 0.0  ;;  %v1023_v4 = vadd.f32 %v1420_v2, %v1140_v57  ;;  %v1014_v5 = vpop.f32.mrb[39].mxu1 }
 0x5dc   :  { %v1062_v6 = vmax.f32 %v1012_v1, 0.0  ;;  %v1015_v7 = vadd.f32 %v1140_v57, %v1014_v5 }
 0x5dd   :  { %1080 = vst [vmem:[%s1727_s4 + $0x30] sm:$0xff] %v1064_v3  ;;  %v1065_v8 = vmax.f32 %v1023_v4, 0.0 }
 0x5de   :  { %1078 = vst [vmem:[%s1727_s4 + $0x20] sm:$0xff] %v1062_v6  ;;  %v1063_v9 = vmax.f32 %v1015_v7, 0.0 }
 0x5df   :  { %1081 = vst [vmem:[%s1727_s4 + $0x38] sm:$0xff] %v1065_v8 }
 0x5e0   :  { %1079 = vst [vmem:[%s1727_s4 + $0x28] sm:$0xff] %v1063_v9  ;;  %v1423_v10 = vpop.f32.mrb[40].mxu1 }
 0x5e1   :  { %v1036_v11 = vadd.f32 %v1423_v10, %v1140_v57  ;;  %v1027_v12 = vpop.f32.mrb[41].mxu1 }
 0x5e2   :  { %v1028_v13 = vadd.f32 %v1140_v57, %v1027_v12  ;;  %v1424_v14 = vpop.f32.mrb[42].mxu1 }
 0x5e3   :  { %v1068_v15 = vmax.f32 %v1036_v11, 0.0  ;;  %v1039_v17 = vadd.f32 %v1424_v14, %v1140_v57  ;;  %v1030_v18 = vpop.f32.mrb[43].mxu1 }
 0x5e4   :  { %v1066_v19 = vmax.f32 %v1028_v13, 0.0  ;;  %v1031_v20 = vadd.f32 %v1140_v57, %v1030_v18 }
 0x5e5   :  { %1084 = vst [vmem:[%s1727_s4 + $0x50] sm:$0xff] %v1068_v15  ;;  %v1069_v21 = vmax.f32 %v1039_v17, 0.0 }
 0x5e6   :  { %1082 = vst [vmem:[%s1727_s4 + $0x40] sm:$0xff] %v1066_v19  ;;  %v1067_v22 = vmax.f32 %v1031_v20, 0.0 }
 0x5e7   :  { %1085 = vst [vmem:[%s1727_s4 + $0x58] sm:$0xff] %v1069_v21 }
 0x5e8   :  { %1083 = vst [vmem:[%s1727_s4 + $0x48] sm:$0xff] %v1067_v22  ;;  %v1427_v23 = vpop.f32.mrb[44].mxu1 }
 0x5e9   :  { %v1052_v24 = vadd.f32 %v1427_v23, %v1140_v57  ;;  %v1043_v25 = vpop.f32.mrb[45].mxu1 }
 0x5ea   :  { %v1044_v27 = vadd.f32 %v1140_v57, %v1043_v25  ;;  %v1428_v28 = vpop.f32.mrb[46].mxu1 }
 0x5eb   :  { %v1072_v29 = vmax.f32 %v1052_v24, 0.0  ;;  %v1055_v30 = vadd.f32 %v1428_v28, %v1140_v57  ;;  %v1046_v31 = vpop.f32.mrb[47].mxu1 }
 0x5ec   :  { %v1070_v32 = vmax.f32 %v1044_v27, 0.0  ;;  %v1047_v33 = vadd.f32 %v1140_v57, %v1046_v31 }
 0x5ed   :  { %1088 = vst [vmem:[%s1727_s4 + $0x70] sm:$0xff] %v1072_v29  ;;  %v1073_v34 = vmax.f32 %v1055_v30, 0.0 }
 0x5ee   :  { %1086 = vst [vmem:[%s1727_s4 + $0x60] sm:$0xff] %v1070_v32  ;;  %v1071_v26 = vmax.f32 %v1047_v33, 0.0 }
 0x5ef   :  { %1089 = vst [vmem:[%s1727_s4 + $0x78] sm:$0xff] %v1073_v34 }
 0x5f0   :  { %1087 = vst [vmem:[%s1727_s4 + $0x68] sm:$0xff] %v1071_v26 }
 0x5f1   :  { %1094 = vsyncpa [#allocation3], 1 }
 0x5f2   :  { %1095 = vsyncpa [#allocation5], 1 }

</bundles_post_ra>
